<compile_context>
chip_gen: v5e
topology: v5e:2x2
jax: 0.10.0
libtpu: 0.0.40
codegen_flags: <defaults>
</compile_context>

<pallas_src>
import math
import jax
import jax.numpy as jnp
from jax.experimental import pallas as pl
from jax.experimental.pallas import tpu as pltpu

HIDDEN = 128        # hidden width (fixed by the reference model)
OBS_PAD = 8         # n_observations padded to a sublane multiple
ACT_PAD = HIDDEN    # n_actions padded to a full 128-lane row (lane-dense out)

# Packed parameter slab layout (rows x 128 cols, bf16):
#   [  0:  8]  w1  (OBS_PAD, 128)   -- rows >= n_obs are zero
#   [  8: 16]  b1  row 8, rest zero
#   [ 16:144]  w2  (128, 128)
#   [144:152]  b2  row 144, rest zero
#   [152:280]  w3  (128, 128)       -- cols >= n_actions are zero
#   [280:288]  b3  row 280, rest zero
PACKED_ROWS = 288


def _round_up(x, m):
    return ((x + m - 1) // m) * m


def dqn_kernel(x_ref, p_ref, out_ref):
    # x_ref: (TB, OBS_PAD) bf16   p_ref: (288, 128) bf16   out_ref: (TB, 128)
    x = x_ref[...]                                   # bf16

    w1 = p_ref[0:8, :]                               # bf16 MXU operands
    b1 = p_ref[8:9, :].astype(jnp.float32)
    w2 = p_ref[16:144, :]
    b2 = p_ref[144:145, :].astype(jnp.float32)
    w3 = p_ref[152:280, :]
    b3 = p_ref[280:281, :].astype(jnp.float32)

    # layer1 + ReLU: bf16 x bf16 -> f32 accumulation; bias/ReLU in f32.
    h1 = jnp.maximum(
        jnp.dot(x, w1, preferred_element_type=jnp.float32) + b1, 0.0)
    # layer2 + ReLU
    h2 = jnp.maximum(
        jnp.dot(h1.astype(jnp.bfloat16), w2,
                preferred_element_type=jnp.float32) + b2, 0.0)
    # layer3 (no activation), written lane-dense (128 wide)
    y = jnp.dot(h2.astype(jnp.bfloat16), w3,
                preferred_element_type=jnp.float32) + b3
    out_ref[...] = y.astype(out_ref.dtype)


def pack_params(params, n_obs, n_actions):
    """Pack (w1,b1,w2,b2,w3,b3) into a single (288, 128) bf16 slab."""
    w1, b1, w2, b2, w3, b3 = params
    w1p = jnp.zeros((OBS_PAD, HIDDEN), jnp.float32).at[:n_obs, :].set(w1)
    b1p = jnp.zeros((8, HIDDEN), jnp.float32).at[0, :].set(b1.reshape(-1))
    b2p = jnp.zeros((8, HIDDEN), jnp.float32).at[0, :].set(b2.reshape(-1))
    w3p = jnp.zeros((HIDDEN, ACT_PAD), jnp.float32).at[:, :n_actions].set(w3)
    b3p = jnp.zeros((8, ACT_PAD), jnp.float32).at[0, :n_actions].set(
        b3.reshape(-1))
    packed = jnp.concatenate(
        [w1p, b1p, w2.astype(jnp.float32), b2p, w3p, b3p], axis=0)
    assert packed.shape == (PACKED_ROWS, HIDDEN)
    return packed.astype(jnp.bfloat16)


def _pick_block(batch, block_b):
    """Batch block size: whole batch when small; otherwise >=2 grid steps so
    both v7x TensorCores get work, with tb a multiple of 256."""
    if batch <= 256:
        return _round_up(batch, 8)
    half = _round_up(-(-batch // 2), 256)
    return min(block_b, half)


def dqn_forward(x, packed_params, n_actions, *, block_b=1024,
                out_dtype=jnp.float32):
    """Fused MLP forward. x: (B, n_obs) f32/bf16 -> (B, n_actions) out_dtype."""
    batch, n_obs = x.shape
    assert n_obs <= OBS_PAD

    tb = _pick_block(batch, block_b)
    padded_b = _round_up(batch, tb)

    # Pad features to OBS_PAD, batch to a multiple of tb, and cast to bf16.
    # (For replay-buffer hot paths, keep states pre-padded/bf16 upstream so
    # this does not add an extra pass over x.)
    x_pad = jnp.zeros((padded_b, OBS_PAD), jnp.bfloat16)
    x_pad = x_pad.at[:batch, :n_obs].set(x.astype(jnp.bfloat16))

    out = pl.pallas_call(
        dqn_kernel,
        out_shape=jax.ShapeDtypeStruct((padded_b, ACT_PAD), out_dtype),
        grid=(padded_b // tb,),
        in_specs=[
            # activations: one block per grid step
            pl.BlockSpec((tb, OBS_PAD), lambda i: (i, 0)),
            # packed weights: constant block -> fetched once, VMEM-resident
            pl.BlockSpec((PACKED_ROWS, HIDDEN), lambda i: (0, 0)),
        ],
        out_specs=pl.BlockSpec((tb, ACT_PAD), lambda i: (i, 0)),
        compiler_params=pltpu.CompilerParams(
            dimension_semantics=("parallel",),
            vmem_limit_bytes=32 * 1024 * 1024),
    )(x_pad, packed_params)

    return out[:batch, :n_actions]


def init_linear_params(key, in_features, out_features):
    """PyTorch nn.Linear default init: U(-1/sqrt(fan_in), 1/sqrt(fan_in)).
    Weights stored as (in, out): transpose of PyTorch's (out, in)."""
    kw, kb = jax.random.split(key)
    bound = 1.0 / math.sqrt(in_features)
    w = jax.random.uniform(kw, (in_features, out_features), jnp.float32,
                           minval=-bound, maxval=bound)
    b = jax.random.uniform(kb, (1, out_features), jnp.float32,
                           minval=-bound, maxval=bound)
    return w, b


if __name__ == "__main__":
    # CartPole-v1: n_observations = 4, n_actions = 2
    n_observations = 4
    n_actions = 2
    batch = 8

    key = jax.random.PRNGKey(0)
    k_x, k1, k2, k3 = jax.random.split(key, 4)

    x = jax.random.normal(k_x, (batch, n_observations), jnp.float32)
    w1, b1 = init_linear_params(k1, n_observations, HIDDEN)
    w2, b2 = init_linear_params(k2, HIDDEN, HIDDEN)
    w3, b3 = init_linear_params(k3, HIDDEN, n_actions)
    params = (w1, b1, w2, b2, w3, b3)

    packed = pack_params(params, n_observations, n_actions)

    out = dqn_forward(x, packed, n_actions)
    out = jax.block_until_ready(out)
    assert out.shape == (batch, n_actions)

    # Reference 1: emulate the kernel's bf16-in / f32-accumulate math.
    bf = jnp.bfloat16
    h1 = jnp.maximum(
        jnp.dot(x.astype(bf), w1.astype(bf),
                preferred_element_type=jnp.float32)
        + b1.astype(bf).astype(jnp.float32), 0.0)
    h2 = jnp.maximum(
        jnp.dot(h1.astype(bf), w2.astype(bf),
                preferred_element_type=jnp.float32)
        + b2.astype(bf).astype(jnp.float32), 0.0)
    ref_bf16 = (jnp.dot(h2.astype(bf), w3.astype(bf),
                        preferred_element_type=jnp.float32)
                + b3.astype(bf).astype(jnp.float32))
    assert jnp.allclose(out, ref_bf16, atol=2e-3, rtol=2e-3)

    # Reference 2: the original full-f32 PyTorch math (looser tolerance,
    # since the kernel now uses bf16 operands with f32 accumulation).
    ref_f32 = jnp.maximum(x @ w1 + b1, 0.0)
    ref_f32 = jnp.maximum(ref_f32 @ w2 + b2, 0.0)
    ref_f32 = ref_f32 @ w3 + b3
    assert jnp.allclose(out, ref_f32, atol=5e-2, rtol=5e-2)

    print("KERNEL_OK")
</pallas_src>

<mosaic_0001>
module attributes {stable_mosaic.version = 11 : i64} {
  func.func @dqn_kernel(%arg0: i32, %arg1: memref<8x8xbf16, #tpu.memory_space<vmem>>, %arg2: memref<288x128xbf16, #tpu.memory_space<vmem>>, %arg3: memref<8x128xf32, #tpu.memory_space<vmem>>) attributes {dimension_semantics = [#tpu.dimension_semantics<parallel>], iteration_bounds = array<i64: 1>, scalar_prefetch = 0 : i64, scratch_operands = 0 : i64, tpu.core_type = #tpu.core_type<tc>, window_params = [{transform_indices = @transform_0, window_bounds = array<i64: 8, 8>}, {pipeline_mode = #tpu.pipeline_mode<synchronous>, transform_indices = @transform_1, window_bounds = array<i64: 288, 128>}, {transform_indices = @transform_2, window_bounds = array<i64: 8, 128>}]} {
    %c0 = arith.constant 0 : index
    %c0_0 = arith.constant 0 : index
    %0 = vector.load %arg1[%c0, %c0_0] : memref<8x8xbf16, #tpu.memory_space<vmem>>, vector<8x8xbf16>
    %c0_1 = arith.constant 0 : index
    %c0_2 = arith.constant 0 : index
    %1 = vector.load %arg2[%c0_1, %c0_2] : memref<288x128xbf16, #tpu.memory_space<vmem>>, vector<8x128xbf16>
    %c8 = arith.constant 8 : index
    %c0_3 = arith.constant 0 : index
    %2 = vector.load %arg2[%c8, %c0_3] : memref<288x128xbf16, #tpu.memory_space<vmem>>, vector<1x128xbf16>
    %3 = arith.extf %2 : vector<1x128xbf16> to vector<1x128xf32>
    %c16 = arith.constant 16 : index
    %c0_4 = arith.constant 0 : index
    %4 = vector.load %arg2[%c16, %c0_4] : memref<288x128xbf16, #tpu.memory_space<vmem>>, vector<128x128xbf16>
    %c144 = arith.constant 144 : index
    %c0_5 = arith.constant 0 : index
    %5 = vector.load %arg2[%c144, %c0_5] : memref<288x128xbf16, #tpu.memory_space<vmem>>, vector<1x128xbf16>
    %6 = arith.extf %5 : vector<1x128xbf16> to vector<1x128xf32>
    %c152 = arith.constant 152 : index
    %c0_6 = arith.constant 0 : index
    %7 = vector.load %arg2[%c152, %c0_6] : memref<288x128xbf16, #tpu.memory_space<vmem>>, vector<128x128xbf16>
    %c280 = arith.constant 280 : index
    %c0_7 = arith.constant 0 : index
    %8 = vector.load %arg2[%c280, %c0_7] : memref<288x128xbf16, #tpu.memory_space<vmem>>, vector<1x128xbf16>
    %9 = arith.extf %8 : vector<1x128xbf16> to vector<1x128xf32>
    %cst = arith.constant dense<0.000000e+00> : vector<8x128xf32>
    %10 = tpu.matmul %0, %1, %cst {dimension_numbers = #tpu.dot_dimension_numbers<[1], [0], [0], [1], [0, 0, 1, 1], [], []>} : vector<8x8xbf16>, vector<8x128xbf16>, vector<8x128xf32> -> vector<8x128xf32>
    %11 = vector.broadcast %3 : vector<1x128xf32> to vector<8x128xf32>
    %12 = arith.addf %10, %11 : vector<8x128xf32>
    %cst_8 = arith.constant 0.000000e+00 : f32
    %13 = vector.broadcast %cst_8 : f32 to vector<8x128xf32>
    %14 = arith.maximumf %12, %13 : vector<8x128xf32>
    %15 = arith.truncf %14 : vector<8x128xf32> to vector<8x128xbf16>
    %cst_9 = arith.constant dense<0.000000e+00> : vector<8x128xf32>
    %16 = tpu.matmul %15, %4, %cst_9 {dimension_numbers = #tpu.dot_dimension_numbers<[1], [0], [0], [1], [0, 0, 1, 1], [], []>} : vector<8x128xbf16>, vector<128x128xbf16>, vector<8x128xf32> -> vector<8x128xf32>
    %17 = vector.broadcast %6 : vector<1x128xf32> to vector<8x128xf32>
    %18 = arith.addf %16, %17 : vector<8x128xf32>
    %cst_10 = arith.constant 0.000000e+00 : f32
    %19 = vector.broadcast %cst_10 : f32 to vector<8x128xf32>
    %20 = arith.maximumf %18, %19 : vector<8x128xf32>
    %21 = arith.truncf %20 : vector<8x128xf32> to vector<8x128xbf16>
    %cst_11 = arith.constant dense<0.000000e+00> : vector<8x128xf32>
    %22 = tpu.matmul %21, %7, %cst_11 {dimension_numbers = #tpu.dot_dimension_numbers<[1], [0], [0], [1], [0, 0, 1, 1], [], []>} : vector<8x128xbf16>, vector<128x128xbf16>, vector<8x128xf32> -> vector<8x128xf32>
    %23 = vector.broadcast %9 : vector<1x128xf32> to vector<8x128xf32>
    %24 = arith.addf %22, %23 : vector<8x128xf32>
    %c0_12 = arith.constant 0 : index
    %c0_13 = arith.constant 0 : index
    %25 = vector.load %arg3[%c0_12, %c0_13] : memref<8x128xf32, #tpu.memory_space<vmem>>, vector<8x128xf32>
    tpu.vector_store %arg3[%c0_12, %c0_13], %24 {strides = array<i32>} : memref<8x128xf32, #tpu.memory_space<vmem>>, vector<8x128xf32>,
    return
  }
  func.func @transform_0(%arg0: i32) -> (i32, i32) {
    %c0_i32 = arith.constant 0 : i32
    %c0_i32_0 = arith.constant 0 : i32
    return %arg0, %c0_i32 : i32, i32
  }
  func.func @transform_1(%arg0: i32) -> (i32, i32) {
    %c0_i32 = arith.constant 0 : i32
    %c0_i32_0 = arith.constant 0 : i32
    %c0_i32_1 = arith.constant 0 : i32
    return %c0_i32, %c0_i32_0 : i32, i32
  }
  func.func @transform_2(%arg0: i32) -> (i32, i32) {
    %c0_i32 = arith.constant 0 : i32
    %c0_i32_0 = arith.constant 0 : i32
    return %arg0, %c0_i32 : i32, i32
  }
}

</mosaic_0001>

<bundles_post_ra>
// kernel: tpu_custom_call.1
= control target key start
LH: loop header
LB: loop body
LE: loop exit
PB: predicated region body
PF: predicated region fallthrough
CT: control target
= control target key end

     0   :  { %7 = vsyncpa [#allocation3], 0  ;;  %s445_s0 = inlined_call_operand.hbm [shape: bf16[8,8], index: 0, kind: input, shape index: {}]   ;;  %s446_s1 = inlined_call_operand.hbm [shape: bf16[288,128], index: 1, kind: input, shape index: {}]   ;;  %s447_s2 = inlined_call_operand.hbm [shape: f32[8,128], index: 2, kind: output, shape index: {}]  }
   0x1   :  { %8 = vsyncpa [#allocation6], 0 }
   0x2   :  { %9 = vsyncpa [#allocation4], 0  ;;  %s15_s11 = sshll.u32 %s445_s0, 4  ;;  %s416_s12 = smov [#allocation2]   ;;  %s16_s11 = int_to_ptr.hbm [resolvable:$true] %s15_s11 }
   0x3   :  { %s17_s13 = sshll.u32 %s416_s12, 4  ;;  %s25_s16 = sshll.u32 %s446_s1, 4  ;;  %s18_s13 = int_to_ptr.vmem [resolvable:$true] %s17_s13  ;;  %s26_s16 = int_to_ptr.hbm [resolvable:$true] %s25_s16 }
   0x4   :  { %20 = dma.hbm_to_vmem [thread:$0]  %s16_s11, 64, %s18_s13, [#allocation3]  }
   0x5   :  { %s417_s17 = smov [#allocation5]   ;;  %s418_s19 = smov 64  }
   0x6   :  { %s27_s18 = sshll.u32 %s417_s17, 4  ;;  %s419_s20 = smov 4   ;;  %s28_s18 = int_to_ptr.vmem [resolvable:$true] %s27_s18 }
   0x7   :  { %33 = dma.hbm_to_vmem [thread:$0]  %s26_s16, 2304, %s28_s18, [#allocation6], %s418_s19, %s418_s19, %s419_s20  }
   0x8   :  { %410 = dma.done.wait [#allocation3], 64  }
   0x9   :  { %411 = vsyncadd [#allocation3], 4294967232 }
   0xa   :  { %412 = dma.done.wait [#allocation6], 2304  }
   0xb   :  { %413 = vsyncadd [#allocation6], 4294964992  ;;  %vm88_vm0 = vcmask 1043456   ;;  %v44_v0 = vld [vmem:[#allocation5] sm:$0xf]  ;;  %vm84_vm1 = vcmask 64512  }
   0xc   :  { %v324_v1 = vld [vmem:[#allocation5 + $0x40] sm:$0xff]  ;;  %v90_v2 = vsel %vm88_vm0, %v44_v0, 0  ;;  %v43_v3 = vld [vmem:[#allocation2] sm:$0xf]  ;;  %v322_v5 = vld [vmem:[#allocation5 + $0x30] sm:$0xff]  ;;  %s420_s0 = smov [#allocation7]  }
   0xd   :  { %99 = vmatpush.bf16.msra.mxu0 %v90_v2  ;;  %156 = vmatpush.bf16.msra.mxu1 %v324_v1  ;;  %v323_v4 = vld [vmem:[#allocation5 + $0x38] sm:$0xff]  ;;  %v321_v6 = vld [vmem:[#allocation5 + $0x28] sm:$0xff]  ;;  %v320_v7 = vld [vmem:[#allocation5 + $0x20] sm:$0xff]  ;;  %s239_s1 = sshll.u32 %s420_s0, 4  ;;  %s241_s23 = sshll.u32 %s447_s2, 4  ;;  %s240_s1 = int_to_ptr.vmem [resolvable:$true] %s239_s1  ;;  %s242_s23 = int_to_ptr.hbm [resolvable:$true] %s241_s23 }
   0xe   :  { %v319_v8 = vld [vmem:[#allocation5 + $0x18] sm:$0xff]  ;;  %v318_v9 = vld [vmem:[#allocation5 + $0x10] sm:$0xff]  ;;  %v317_v10 = vld [vmem:[#allocation5 + $0x8] sm:$0xff] }
   0xf   :  { %v332_v11 = vld [vmem:[#allocation5 + $0x84] sm:$0xff]  ;;  %v331_v12 = vld [vmem:[#allocation5 + $0x7c] sm:$0xff]  ;;  %v330_v13 = vld [vmem:[#allocation5 + $0x74] sm:$0xff] }
  0x10   :  { %252 = vmatmul.msk.bf16.vlgmr.msra.gmra.mxu0 %vm84_vm1, %v43_v3  ;;  %220 = vmatpush.bf16.msra.mxu2 %v332_v11  ;;  %v329_v14 = vld [vmem:[#allocation5 + $0x6c] sm:$0xff]  ;;  %v45_v15 = vld [vmem:[#allocation5 + $0x4] sm:$0x1]  ;;  %v327_v18 = vld [vmem:[#allocation5 + $0x5c] sm:$0xff] }
  0x11   :  { %157 = vmatpush.bf16.msra.mxu1 %v323_v4  ;;  %v328_v16 = vld [vmem:[#allocation5 + $0x64] sm:$0xff]  ;;  %v46_v17 = vunpack.c.l.bf16 %v45_v15  ;;  %v326_v25 = vld [vmem:[#allocation5 + $0x54] sm:$0xff]  ;;  %v325_v26 = vld [vmem:[#allocation5 + $0x4c] sm:$0xff] }
  0x12   :  { %v63_v27 = vld [vmem:[#allocation5 + $0x48] sm:$0x1]  ;;  %v81_v35 = vld [vmem:[#allocation5 + $0x8c] sm:$0x1] }
  0x13   :  { %v83_v19 = vperm.slane %v46_v17, 0  ;;  %v64_v28 = vunpack.c.l.bf16 %v63_v27  ;;  %v82_v36 = vunpack.c.l.bf16 %v81_v35 }
  0x14   :  { %221 = vmatpush.bf16.msra.mxu2 %v331_v12 }
  0x15   :  { %158 = vmatpush.bf16.msra.mxu1 %v322_v5  ;;  %v107_v29 = vperm.slane %v64_v28, 0  ;;  %v171_v37 = vperm.slane %v82_v36, 0 }
  0x18   :  { %222 = vmatpush.bf16.msra.mxu2 %v330_v13 }
  0x19   :  { %159 = vmatpush.bf16.msra.mxu1 %v321_v6 }
  0x1c   :  { %223 = vmatpush.bf16.msra.mxu2 %v329_v14 }
  0x1d   :  { %160 = vmatpush.bf16.msra.mxu1 %v320_v7 }
  0x20   :  { %224 = vmatpush.bf16.msra.mxu2 %v328_v16 }
  0x21   :  { %161 = vmatpush.bf16.msra.mxu1 %v319_v8 }
  0x24   :  { %225 = vmatpush.bf16.msra.mxu2 %v327_v18 }
  0x25   :  { %162 = vmatpush.bf16.msra.mxu1 %v318_v9 }
  0x28   :  { %226 = vmatpush.bf16.msra.mxu2 %v326_v25 }
  0x29   :  { %163 = vmatpush.bf16.msra.mxu1 %v317_v10 }
  0x2c   :  { %227 = vmatpush.bf16.msra.mxu2 %v325_v26 }
  0x8d   :  { %v101_v20 = vpop.f32.mrf.mxu0 }
  0x8e   :  { %v102_v21 = vadd.f32 %v101_v20, %v83_v19 }
  0x90   :  { %v105_v22 = vmax.f32 %v102_v21, 0.0 }
  0x92   :  { %v106_v23 = vpack.c.bf16 %v105_v22, %v105_v22 }
  0x94   :  { %164 = vmatmul.bf16.vlgmr.msra.gmra.mxu1 %v106_v23 }
  0x95   :  { %v103_v24 = vpop.f32.mrf.mxu0 }
 0x111   :  { %v165_v30 = vpop.f32.mrf.mxu1 }
 0x112   :  { %v166_v31 = vadd.f32 %v165_v30, %v107_v29 }
 0x114   :  { %v169_v32 = vmax.f32 %v166_v31, 0.0 }
 0x116   :  { %v170_v33 = vpack.c.bf16 %v169_v32, %v169_v32 }
 0x118   :  { %228 = vmatmul.bf16.vlgmr.msra.gmra.mxu2 %v170_v33 }
 0x119   :  { %v167_v34 = vpop.f32.mrf.mxu1 }
 0x19b   :  { %v229_v38 = vpop.f32.mrf.mxu2 }
 0x19c   :  { %v230_v39 = vadd.f32 %v229_v38, %v171_v37 }
 0x19e   :  { %233 = vst [vmem:[#allocation7] sm:$0xff] %v230_v39 }
 0x19f   :  { %244 = dma.vmem_to_hbm [thread:$0]  %s240_s1, 128, %s242_s23, [#allocation4]  }
 0x1a3   :  { %v231_v40 = vpop.f32.mrf.mxu2 }
 0x1a4   :  { %414 = dma.done.wait [#allocation4], 128  }
 0x1a5   :  { %415 = vsyncadd [#allocation4], 4294967168 }
 0x1a6   :  { %249 = vsyncpa [#allocation3], 1 }
 0x1a7   :  { %250 = vsyncpa [#allocation6], 1 }
 0x1a8   :  { %251 = vsyncpa [#allocation4], 1 }

</bundles_post_ra>
